<compile_context>
chip_gen: v7x
topology: tpu7x:2x2x1
jax: 0.10.0
libtpu: 0.0.40
codegen_flags: <defaults>
</compile_context>

<pallas_src>
import math
import jax
import jax.numpy as jnp
from jax.experimental import pallas as pl
from jax.experimental.pallas import tpu as pltpu


_VMEM_LIMIT_BYTES = 48 * 1024 * 1024      # safe ceiling on v5e/v6e/v7x (v7x has 64 MiB physical)
_RESIDENT_VMEM_BUDGET = 40 * 1024 * 1024  # leave headroom under the limit above


def _round_up(v, m):
    return ((v + m - 1) // m) * m


# ---------------------------------------------------------------------------
# Kernels
# ---------------------------------------------------------------------------
# Path 1: weight resident in VMEM, 1-D grid over row-blocks of x.
def _resident_kernel_bias(x_ref, w_ref, b_ref, o_ref):
    acc = jnp.dot(x_ref[...].astype(jnp.bfloat16), w_ref[...],
                  preferred_element_type=jnp.float32)
    o_ref[...] = (acc + b_ref[...]).astype(o_ref.dtype)


def _resident_kernel_nobias(x_ref, w_ref, o_ref):
    acc = jnp.dot(x_ref[...].astype(jnp.bfloat16), w_ref[...],
                  preferred_element_type=jnp.float32)
    o_ref[...] = acc.astype(o_ref.dtype)


# Path 2: K-tiled accumulation with an f32 VMEM scratch accumulator.
def _ktiled_kernel_bias(x_ref, w_ref, b_ref, o_ref, acc_ref):
    @pl.when(pl.program_id(2) == 0)
    def _():
        acc_ref[...] = jnp.zeros_like(acc_ref)

    acc_ref[...] += jnp.dot(x_ref[...].astype(jnp.bfloat16), w_ref[...],
                            preferred_element_type=jnp.float32)

    @pl.when(pl.program_id(2) == pl.num_programs(2) - 1)
    def _():
        o_ref[...] = (acc_ref[...] + b_ref[...]).astype(o_ref.dtype)


def _ktiled_kernel_nobias(x_ref, w_ref, o_ref, acc_ref):
    @pl.when(pl.program_id(2) == 0)
    def _():
        acc_ref[...] = jnp.zeros_like(acc_ref)

    acc_ref[...] += jnp.dot(x_ref[...].astype(jnp.bfloat16), w_ref[...],
                            preferred_element_type=jnp.float32)

    @pl.when(pl.program_id(2) == pl.num_programs(2) - 1)
    def _():
        o_ref[...] = acc_ref[...].astype(o_ref.dtype)


# ---------------------------------------------------------------------------
# pallas_call wrapper
# ---------------------------------------------------------------------------
def pallas_linear(x2d, w_t, bias2d, *, resident, tile_m, tile_k=None, out_dtype=None):
    """y = x2d @ w_t (+ bias).

    x2d    : (M, K) float array (f32 or bf16); cast to bf16 inside the kernel.
    w_t    : (Kp, N) bfloat16 weight, pre-transposed; Kp >= K (zero-padded
             along K for the K-tiled path).
    bias2d : (1, N) float32 or None.
    """
    M, K = x2d.shape
    Kp, N = w_t.shape
    if out_dtype is None:
        out_dtype = x2d.dtype

    cost = pl.CostEstimate(
        flops=2 * M * N * K,
        transcendentals=0,
        bytes_accessed=int(M * K * x2d.dtype.itemsize
                           + Kp * N * 2
                           + (N * 4 if bias2d is not None else 0)
                           + M * N * jnp.dtype(out_dtype).itemsize),
    )

    if resident:
        # Weight stays in VMEM (constant block index -> single DMA); grid over M only.
        tm = min(tile_m, M)
        grid = (pl.cdiv(M, tm),)
        x_spec = pl.BlockSpec((tm, K), lambda i: (i, 0))
        w_spec = pl.BlockSpec((K, N), lambda i: (0, 0))
        o_spec = pl.BlockSpec((tm, N), lambda i: (i, 0))
        if bias2d is not None:
            in_specs = [x_spec, w_spec, pl.BlockSpec((1, N), lambda i: (0, 0))]
            kernel = _resident_kernel_bias
            args = (x2d, w_t, bias2d)
        else:
            in_specs = [x_spec, w_spec]
            kernel = _resident_kernel_nobias
            args = (x2d, w_t)
        return pl.pallas_call(
            kernel,
            out_shape=jax.ShapeDtypeStruct((M, N), out_dtype),
            grid_spec=pltpu.PrefetchScalarGridSpec(
                num_scalar_prefetch=0, grid=grid,
                in_specs=in_specs, out_specs=o_spec),
            compiler_params=pltpu.CompilerParams(
                dimension_semantics=("parallel",),
                vmem_limit_bytes=_VMEM_LIMIT_BYTES),
            cost_estimate=cost,
        )(*args)

    # ---- K-tiled accumulator path (large weights; VMEM-bounded) ----
    if Kp > K:
        # Weight was zero-padded along K at init; pad activations to match.
        x2d = jnp.pad(x2d, ((0, 0), (0, Kp - K)))
    tm = min(tile_m, M)
    tn = N if N <= 512 else 512
    tk = tile_k if tile_k is not None else (Kp if Kp <= 2048 else 1024)
    grid = (pl.cdiv(M, tm), pl.cdiv(N, tn), pl.cdiv(Kp, tk))

    x_spec = pl.BlockSpec((tm, tk), lambda i, j, k: (i, k))
    w_spec = pl.BlockSpec((tk, tn), lambda i, j, k: (k, j))
    o_spec = pl.BlockSpec((tm, tn), lambda i, j, k: (i, j))
    scratch = [pltpu.VMEM((tm, tn), jnp.float32)]
    if bias2d is not None:
        in_specs = [x_spec, w_spec, pl.BlockSpec((1, tn), lambda i, j, k: (0, j))]
        kernel = _ktiled_kernel_bias
        args = (x2d, w_t, bias2d)
    else:
        in_specs = [x_spec, w_spec]
        kernel = _ktiled_kernel_nobias
        args = (x2d, w_t)
    return pl.pallas_call(
        kernel,
        out_shape=jax.ShapeDtypeStruct((M, N), out_dtype),
        grid_spec=pltpu.PrefetchScalarGridSpec(
            num_scalar_prefetch=0, grid=grid,
            in_specs=in_specs, out_specs=o_spec,
            scratch_shapes=scratch),
        compiler_params=pltpu.CompilerParams(
            dimension_semantics=("parallel", "parallel", "arbitrary"),
            vmem_limit_bytes=_VMEM_LIMIT_BYTES),
        cost_estimate=cost,
    )(*args)


# ---------------------------------------------------------------------------
# Module wrapper mirroring the PyTorch `Linear`
# ---------------------------------------------------------------------------
class Linear:
    def __init__(self, n_neurons, input_shape=None, input_size=None,
                 bias=True, combine_dims=False, key=None):
        self.combine_dims = combine_dims
        if input_shape is None and input_size is None:
            raise ValueError("Expected one of input_shape or input_size")
        if input_size is None:
            input_size = input_shape[-1]
            if len(input_shape) == 4 and self.combine_dims:
                input_size = input_shape[2] * input_shape[3]
        self.input_size = input_size
        self.n_neurons = n_neurons

        # Deterministic init matching torch.nn.Linear defaults.
        if key is None:
            key = jax.random.PRNGKey(0)
        kw, kb = jax.random.split(key)
        bound = 1.0 / math.sqrt(input_size)
        # torch-style master copy: (n_neurons, input_size), float32
        self.weight = jax.random.uniform(
            kw, (n_neurons, input_size), jnp.float32, -bound, bound)
        self.bias = (
            jax.random.uniform(kb, (n_neurons,), jnp.float32, -bound, bound)
            if bias else None)
        self.bias2d = (self.bias.reshape(1, n_neurons)
                       if self.bias is not None else None)

        # ---- plan kernel path once, from layer dims (M-independent) ----
        K, Nn = input_size, n_neurons
        self._resident = False
        self._tile_m = 512
        for tm in (512, 256, 128):
            need = (2 * tm * K * 4      # x tiles (f32 worst case), double-buffered
                    + 2 * K * Nn * 2    # bf16 weight (pipeline keeps 2 buffers)
                    + 2 * tm * Nn * 4   # f32 output tiles, double-buffered
                    + 2 * Nn * 4)       # bias
            if need <= _RESIDENT_VMEM_BUDGET:
                self._resident = True
                self._tile_m = tm
                break

        # Kernel-side weight: pre-transposed to (K, N), cast to bf16 once,
        # and (K-tiled path only) zero-padded along K to a multiple of tile_k.
        w_t = self.weight.T.astype(jnp.bfloat16)
        self._tile_k = None
        if not self._resident:
            self._tile_k = K if K <= 2048 else 1024
            k_pad = _round_up(K, self._tile_k)
            if k_pad > K:
                w_t = jnp.pad(w_t, ((0, k_pad - K), (0, 0)))
        self.weight_t = w_t

    def __call__(self, x):
        if x.ndim == 4 and self.combine_dims:
            x = x.reshape(x.shape[0], x.shape[1], x.shape[2] * x.shape[3])
        lead_shape = x.shape[:-1]
        k = x.shape[-1]
        x2d = x.reshape(-1, k)  # keep input dtype; kernel casts to bf16 for the MXU
        y2d = pallas_linear(
            x2d, self.weight_t, self.bias2d,
            resident=self._resident, tile_m=self._tile_m,
            tile_k=self._tile_k, out_dtype=x.dtype)
        return y2d.reshape(*lead_shape, self.n_neurons)


# ---------------------------------------------------------------------------
# Demo / self-test
# ---------------------------------------------------------------------------
if __name__ == "__main__":
    key = jax.random.PRNGKey(0)
    kx, kp, kx2, kw2, kb2 = jax.random.split(key, 5)

    # --- 3-D input (B, T, D), like the docstring example -------------------
    B, T, D, N = 2, 8, 32, 64
    x = jax.random.normal(kx, (B, T, D), jnp.float32)
    lin = Linear(n_neurons=N, input_shape=(B, T, D), key=kp)
    y = jax.block_until_ready(lin(x))
    ref = jnp.einsum("btd,nd->btn",
                     x.astype(jnp.bfloat16), lin.weight.astype(jnp.bfloat16),
                     preferred_element_type=jnp.float32) + lin.bias
    assert y.shape == (B, T, N), y.shape
    assert jnp.allclose(y, ref, atol=2e-3, rtol=2e-3), "mismatch (3-D path)"

    # --- 4-D input with combine_dims ----------------------------------------
    B2, T2, C, F = 2, 4, 8, 16
    x4 = jax.random.normal(kx2, (B2, T2, C, F), jnp.float32)
    lin4 = Linear(n_neurons=96, input_shape=(B2, T2, C, F),
                  combine_dims=True, key=kp)
    y4 = jax.block_until_ready(lin4(x4))
    x4f = x4.reshape(B2, T2, C * F)
    ref4 = jnp.einsum("btd,nd->btn",
                      x4f.astype(jnp.bfloat16), lin4.weight.astype(jnp.bfloat16),
                      preferred_element_type=jnp.float32) + lin4.bias
    assert y4.shape == (B2, T2, 96), y4.shape
    assert jnp.allclose(y4, ref4, atol=2e-3, rtol=2e-3), "mismatch (combine_dims path)"

    # --- Exercise the K-tiled accumulator path directly ---------------------
    M3, K3, N3 = 128, 256, 384
    x3 = jax.random.normal(kx2, (M3, K3), jnp.float32)
    w3 = jax.random.normal(kw2, (N3, K3), jnp.float32) * 0.05
    b3 = jax.random.normal(kb2, (N3,), jnp.float32) * 0.1
    y3 = pallas_linear(x3, w3.T.astype(jnp.bfloat16), b3.reshape(1, N3),
                       resident=False, tile_m=128, tile_k=128,
                       out_dtype=jnp.float32)
    y3 = jax.block_until_ready(y3)
    ref3 = jnp.dot(x3.astype(jnp.bfloat16), w3.T.astype(jnp.bfloat16),
                   preferred_element_type=jnp.float32) + b3
    assert jnp.allclose(y3, ref3, atol=2e-3, rtol=2e-3), "mismatch (K-tiled path)"

    print("KERNEL_OK")
</pallas_src>

<mosaic_0001>
module attributes {stable_mosaic.version = 11 : i64} {
  func.func @_resident_kernel_bias(%arg0: i32, %arg1: memref<16x32xf32, #tpu.memory_space<vmem>>, %arg2: memref<32x64xbf16, #tpu.memory_space<vmem>>, %arg3: memref<1x64xf32, #tpu.memory_space<vmem>>, %arg4: memref<16x64xf32, #tpu.memory_space<vmem>>) attributes {dimension_semantics = [#tpu.dimension_semantics<parallel>], iteration_bounds = array<i64: 1>, scalar_prefetch = 0 : i64, scratch_operands = 0 : i64, tpu.core_type = #tpu.core_type<tc>, window_params = [{transform_indices = @transform_0, window_bounds = array<i64: 16, 32>}, {pipeline_mode = #tpu.pipeline_mode<synchronous>, transform_indices = @transform_1, window_bounds = array<i64: 32, 64>}, {pipeline_mode = #tpu.pipeline_mode<synchronous>, transform_indices = @transform_2, window_bounds = array<i64: 1, 64>}, {transform_indices = @transform_3, window_bounds = array<i64: 16, 64>}]} {
    %c0 = arith.constant 0 : index
    %c0_0 = arith.constant 0 : index
    %0 = vector.load %arg1[%c0, %c0_0] : memref<16x32xf32, #tpu.memory_space<vmem>>, vector<16x32xf32>
    %1 = arith.truncf %0 : vector<16x32xf32> to vector<16x32xbf16>
    %c0_1 = arith.constant 0 : index
    %c0_2 = arith.constant 0 : index
    %2 = vector.load %arg2[%c0_1, %c0_2] : memref<32x64xbf16, #tpu.memory_space<vmem>>, vector<32x64xbf16>
    %cst = arith.constant dense<0.000000e+00> : vector<16x64xf32>
    %3 = tpu.matmul %1, %2, %cst {dimension_numbers = #tpu.dot_dimension_numbers<[1], [0], [0], [1], [0, 0, 1, 1], [], []>} : vector<16x32xbf16>, vector<32x64xbf16>, vector<16x64xf32> -> vector<16x64xf32>
    %c0_3 = arith.constant 0 : index
    %c0_4 = arith.constant 0 : index
    %4 = vector.load %arg3[%c0_3, %c0_4] : memref<1x64xf32, #tpu.memory_space<vmem>>, vector<1x64xf32>
    %5 = vector.broadcast %4 : vector<1x64xf32> to vector<16x64xf32>
    %6 = arith.addf %3, %5 : vector<16x64xf32>
    %c0_5 = arith.constant 0 : index
    %c0_6 = arith.constant 0 : index
    %7 = vector.load %arg4[%c0_5, %c0_6] : memref<16x64xf32, #tpu.memory_space<vmem>>, vector<16x64xf32>
    tpu.vector_store %arg4[%c0_5, %c0_6], %6 {strides = array<i32>} : memref<16x64xf32, #tpu.memory_space<vmem>>, vector<16x64xf32>,
    return
  }
  func.func @transform_0(%arg0: i32) -> (i32, i32) {
    %c0_i32 = arith.constant 0 : i32
    %c0_i32_0 = arith.constant 0 : i32
    return %arg0, %c0_i32 : i32, i32
  }
  func.func @transform_1(%arg0: i32) -> (i32, i32) {
    %c0_i32 = arith.constant 0 : i32
    %c0_i32_0 = arith.constant 0 : i32
    %c0_i32_1 = arith.constant 0 : i32
    return %c0_i32, %c0_i32_0 : i32, i32
  }
  func.func @transform_2(%arg0: i32) -> (i32, i32) {
    %c0_i32 = arith.constant 0 : i32
    %c0_i32_0 = arith.constant 0 : i32
    %c0_i32_1 = arith.constant 0 : i32
    return %c0_i32, %c0_i32_0 : i32, i32
  }
  func.func @transform_3(%arg0: i32) -> (i32, i32) {
    %c0_i32 = arith.constant 0 : i32
    %c0_i32_0 = arith.constant 0 : i32
    return %arg0, %c0_i32 : i32, i32
  }
}

</mosaic_0001>

<bundles_post_ra>
// kernel: tpu_custom_call.1
= control target key start
LH: loop header
LB: loop body
LE: loop exit
PB: predicated region body
PF: predicated region fallthrough
CT: control target
= control target key end

     0   :  { %8 = vsyncpa [#allocation3], 0  ;;  %s308_s0 = inlined_call_operand.hbm [shape: f32[16,32], index: 0, kind: input, shape index: {}]   ;;  %s309_s1 = inlined_call_operand.hbm [shape: bf16[32,64], index: 1, kind: input, shape index: {}]   ;;  %s310_s2 = inlined_call_operand.vmem [shape: f32[1,64], index: 2, kind: input, shape index: {}]   ;;  %s311_s3 = inlined_call_operand.hbm [shape: f32[16,64], index: 3, kind: output, shape index: {}]  }
   0x1   :  { %9 = vsyncpa [#allocation6], 0 }
   0x2   :  { %10 = vsyncpa [#allocation4], 0  ;;  %s234_s12 = smov [#allocation2]   ;;  %s162_s16 = scalar_lea.hbm %s308_s0, 256 }
   0x3   :  { %s16_s13 = sshll.u32 %s234_s12, 4  ;;  %p163_p0 = scmp.ne.s32.totalorder %s308_s0, %s162_s16  ;;  %s17_s13 = int_to_ptr.vmem [resolvable:$true] %s16_s13 }
   0x4   :  { %p166_p1 = scmp.lt.u32.totalorder %s162_s16, %s308_s0 }
   0x6   :  { %p168_p2 = pnand %p166_p1, %p163_p0 }
   0x8   :  { %171 = shalt.err (!%p168_p2)
}
   0x9   :  { %s172_s21 = scalar_lea.vmem %s17_s13, 256  ;;  %p177_p4 = scmp.lt.s32.totalorder %s17_s13, %s17_s13 }
   0xa   :  { %p173_p3 = scmp.ne.s32.totalorder %s17_s13, %s172_s21  ;;  %p178_p5 = scmp.lt.s32.totalorder %s172_s21, %s172_s21 }
   0xc   :  { %p179_p6 = por %p178_p5, %p177_p4 }
   0xe   :  { %p180_p7 = pnand %p179_p6, %p173_p3 }
  0x10   :  { %183 = shalt.err (!%p180_p7)
}
  0x11   :  { %s235_s22 = smov 128   ;;  %s236_s23 = smov 8  }
  0x12   :  { %22 = dma.hbm_to_vmem [thread:$0]  %s308_s0, 256, %s17_s13, [#allocation3], %s235_s22, %s235_s22, %s236_s23  }
  0x13   :  { %s237_s26 = smov [#allocation5]   ;;  %s184_s30 = scalar_lea.hbm %s309_s1, 256 }
  0x14   :  { %s28_s27 = sshll.u32 %s237_s26, 4  ;;  %p185_p8 = scmp.ne.s32.totalorder %s309_s1, %s184_s30  ;;  %s29_s27 = int_to_ptr.vmem [resolvable:$true] %s28_s27 }
  0x15   :  { %p188_p9 = scmp.lt.u32.totalorder %s184_s30, %s309_s1 }
  0x17   :  { %p190_p10 = pnand %p188_p9, %p185_p8 }
  0x19   :  { %193 = shalt.err (!%p190_p10)
}
  0x1a   :  { %s194_s8 = scalar_lea.vmem %s29_s27, 256  ;;  %p199_p12 = scmp.lt.s32.totalorder %s29_s27, %s29_s27 }
  0x1b   :  { %p195_p11 = scmp.ne.s32.totalorder %s29_s27, %s194_s8  ;;  %p200_p13 = scmp.lt.s32.totalorder %s194_s8, %s194_s8 }
  0x1d   :  { %p201_p0 = por %p200_p13, %p199_p12 }
  0x1f   :  { %p202_p1 = pnand %p201_p0, %p195_p11 }
  0x21   :  { %205 = shalt.err (!%p202_p1)
}
  0x22   :  { %s238_s0 = smov 64   ;;  %s239_s9 = smov 4  }
  0x23   :  { %34 = dma.hbm_to_vmem [thread:$0]  %s309_s1, 256, %s29_s27, [#allocation6], %s238_s0, %s238_s0, %s239_s9  }
  0x24   :  { %228 = dma.done.wait [#allocation3], 256  }
  0x25   :  { %229 = vsyncadd [#allocation3], 4294967040 }
  0x26   :  { %230 = dma.done.wait [#allocation6], 256  }
  0x27   :  { %231 = vsyncadd [#allocation6], 4294967040  ;;  %v240_v0 = vmov 0.0   ;;  %vm241_vm0 = vmmov 0   ;;  %v160_v1 = vld [vmem:[#allocation5] sm:$0xff]   ;;  %v161_v2 = vld [vmem:[#allocation5 + $0x8] sm:$0xff]  }
  0x28   :  { %143 = vmatprep.subr.bf16.mxu0 %v240_v0  ;;  %147 = vmatprep.mubr.msk.bf16.mxu0 %vm241_vm0, %v240_v0  ;;  %v44_v3 = vld [vmem:[#allocation2] sm:$0xff]  ;;  %v45_v4 = vld [vmem:[#allocation2 + $0x8] sm:$0xff]  ;;  %vm70_vm1 = vcmask 261120   ;;  %vm115_vm2 = vcmask 523264   ;;  %s242_s13 = smov [#allocation7]  }
  0x29   :  { %144 = vmatpush3.bf16.msra.mxu0 %v160_v1  ;;  %v46_v5 = vpack.c.bf16 %v45_v4, %v44_v3  ;;  %v136_v6 = vld [vmem:[%s310_s2] ss:$0 sm:$0xff]  ;;  %s123_s14 = sshll.u32 %s242_s13, 4  ;;  %s124_s14 = int_to_ptr.vmem [resolvable:$true] %s123_s14 }
  0x2a   :  { %145 = vmatprep.subr.bf16.mxu0 %v240_v0  ;;  %s206_s15 = scalar_lea.vmem %s124_s14, 256  ;;  %p211_p3 = scmp.lt.s32.totalorder %s124_s14, %s124_s14 }
  0x2b   :  { %p207_p2 = scmp.ne.s32.totalorder %s124_s14, %s206_s15  ;;  %p212_p4 = scmp.lt.s32.totalorder %s206_s15, %s206_s15 }
  0x2d   :  { %146 = vmatpush3.bf16.msra.mxu0 %v161_v2  ;;  %p213_p5 = por %p212_p4, %p211_p3 }
  0x2f   :  { %p214_p6 = pnand %p213_p5, %p207_p2 }
  0x30   :  { %148 = vmatmul.mubr.msk.bf16.vlgmr.msra.gmra.mrb[0].mxu0 %vm70_vm1, %v46_v5 }
 0x103   :  { %v108_v7 = vpop.f32.mrb[0].mxu0 }
 0x104   :  { %v109_v8 = vadd.f32 %v136_v6, %v108_v7  ;;  %v149_v9 = vpop.f32.mrb[1].mxu0 }
 0x105   :  { %v111_v10 = vpop.f32.mrb[2].mxu0 }
 0x106   :  { %v112_v11 = vadd.f32 %v136_v6, %v111_v10  ;;  %v150_v12 = vpop.f32.mrb[3].mxu0  ;;  %116 = vst.msk [vmem:[#allocation7] sm:$0xff] %vm115_vm2, %v109_v8 }
 0x108   :  { %117 = vst.msk [vmem:[#allocation7 + $0x8] sm:$0xff] %vm115_vm2, %v112_v11 }
 0x109   :  { %217 = shalt.err (!%p214_p6)
}
 0x10a   :  { %s218_s17 = scalar_lea.hbm %s311_s3, 256 }
 0x10b   :  { %p219_p7 = scmp.ne.s32.totalorder %s311_s3, %s218_s17  ;;  %p222_p8 = scmp.lt.u32.totalorder %s218_s17, %s311_s3 }
 0x10d   :  { %p224_p9 = pnand %p222_p8, %p219_p7 }
 0x10f   :  { %227 = shalt.err (!%p224_p9)
}
 0x110   :  { %129 = dma.vmem_to_hbm [thread:$0]  %s124_s14, 256, %s311_s3, [#allocation4], %s235_s22, %s235_s22, %s236_s23  }
 0x111   :  { %232 = dma.done.wait [#allocation4], 256  }
 0x112   :  { %233 = vsyncadd [#allocation4], 4294967040 }
 0x113   :  { %133 = vsyncpa [#allocation3], 1 }
 0x114   :  { %134 = vsyncpa [#allocation6], 1 }
 0x115   :  { %135 = vsyncpa [#allocation4], 1 }

</bundles_post_ra>
